<compile_context>
chip_gen: v7x
topology: tpu7x:2x2x1
jax: 0.10.0
libtpu: 0.0.40
codegen_flags: <defaults>
</compile_context>

<pallas_src>
import functools

import numpy as np
import jax
import jax.numpy as jnp
from jax.experimental import pallas as pl
from jax.experimental.pallas import tpu as pltpu


def _round_up(x, m):
    return ((x + m - 1) // m) * m


def _hard_mix_kernel(x1_ref, x2_ref, w1_ref, w2_ref, b_ref, o_ref, *, a1, a2):
    """out = a1*tanh(x1@w_intra + b1) + a2*tanh(x2@w_inter + b2), fused.

    x1_ref: (TM, in1) intra features     w1_ref: (in1, 2) [w_intra | 0]
    x2_ref: (TM, in2) inter features     w2_ref: (in2, 2) [0 | w_inter]
    b_ref : (1, 2) f32 biases [b_intra, b_inter]
    o_ref : (TM, 1) f32 output
    """
    z = jnp.dot(x1_ref[...], w1_ref[...], preferred_element_type=jnp.float32)
    z = z + jnp.dot(x2_ref[...], w2_ref[...], preferred_element_type=jnp.float32)
    z = z + b_ref[...]                       # (TM, 2) + (1, 2) broadcast, f32
    zt = jnp.tanh(z)                         # one tanh over the fused (TM, 2)
    o_ref[...] = a1 * zt[:, 0:1] + a2 * zt[:, 1:2]


def _choose_tm(T, tm_requested, itemsize):
    sub = 16 if itemsize < 4 else 8
    # Keep >= ~8 grid steps when T is large (v7x megacore), never below 512 rows.
    cap = max(512, _round_up(-(-T // 8), 512))
    TM = _round_up(min(int(tm_requested), cap), sub)
    if TM >= T:                              # single ragged step is enough
        TM = _round_up(T, 8)
    return TM


def hard_mix_predict(intra_tensor, inter_tensor,
                     w_intra, b_intra, w_inter, b_inter,
                     a1=0.6, a2=0.2, tm=8192):
    """Pallas-backed tail of HardMixPredictor.forward.

    intra_tensor: (T, in1), inter_tensor: (T, in2)  (f32 or bf16, cast upstream)
    w_intra: (1, in1) torch nn.Linear layout, b_intra: (1,)
    w_inter: (1, in2), b_inter: (1,)
    returns: (T, 1) f32
    """
    T, in1 = intra_tensor.shape
    T2, in2 = inter_tensor.shape
    assert T == T2, "intra/inter feature row counts must match"

    feat_dtype = intra_tensor.dtype
    inter_tensor = inter_tensor.astype(feat_dtype)
    itemsize = jnp.dtype(feat_dtype).itemsize

    TM = _choose_tm(T, tm, itemsize)
    grid = (pl.cdiv(T, TM),)                 # ragged last tile handled by Pallas

    # Tiny resident fused weights: col 0 = intra branch, col 1 = inter branch.
    w1 = jnp.zeros((in1, 2), feat_dtype).at[:, 0].set(
        w_intra.reshape(-1).astype(feat_dtype))
    w2 = jnp.zeros((in2, 2), feat_dtype).at[:, 1].set(
        w_inter.reshape(-1).astype(feat_dtype))
    b = jnp.concatenate([b_intra.reshape(-1), b_inter.reshape(-1)]
                        ).reshape(1, 2).astype(jnp.float32)

    cost = pl.CostEstimate(
        flops=2 * T * (in1 + in2) * 2,
        transcendentals=2 * T,
        bytes_accessed=(T * (in1 + in2) * itemsize      # feature reads
                        + (in1 + in2) * 2 * itemsize    # weights (resident)
                        + 8                             # biases
                        + T * 4),                       # f32 output
    )

    out = pl.pallas_call(
        functools.partial(_hard_mix_kernel, a1=float(a1), a2=float(a2)),
        out_shape=jax.ShapeDtypeStruct((T, 1), jnp.float32),
        grid=grid,
        in_specs=[
            pl.BlockSpec((TM, in1), lambda i: (i, 0)),   # intra, tiled over T
            pl.BlockSpec((TM, in2), lambda i: (i, 0)),   # inter, tiled over T
            pl.BlockSpec((in1, 2), lambda i: (0, 0)),    # fused intra weight
            pl.BlockSpec((in2, 2), lambda i: (0, 0)),    # fused inter weight
            pl.BlockSpec((1, 2), lambda i: (0, 0)),      # biases
        ],
        out_specs=pl.BlockSpec((TM, 1), lambda i: (i, 0)),
        compiler_params=pltpu.CompilerParams(
            dimension_semantics=("parallel",)),
        cost_estimate=cost,
    )(intra_tensor, inter_tensor, w1, w2, b)

    return out


def build_feature_tensors(d_intra, d_inter, did_sub,
                          t_intra, t_inter, tid_sub,
                          rel_emb_intra, rel_emb_inter,
                          triplets, id2rel, dtype=jnp.bfloat16):
    """Vectorized replacement of the per-triplet Python gather/concat loop.

    Dict lookups (id2rel / did_sub / tid_sub) stay host-side glue; the embedding
    gathers + concats run as batched XLA ops, emitting features in `dtype`
    (bf16 by default -> producers write half the HBM bytes for the kernel).
    """
    num_drugs = d_intra.shape[0]
    u_rows, v_rows, r_idx = [], [], []
    for (u, v, r) in triplets:
        utype, _, vtype = id2rel[r]
        u_rows.append(did_sub[u] if utype == 'drug' else num_drugs + tid_sub[u])
        v_rows.append(did_sub[v] if vtype == 'drug' else num_drugs + tid_sub[v])
        r_idx.append(r)
    u_rows = jnp.asarray(np.asarray(u_rows, dtype=np.int32))
    v_rows = jnp.asarray(np.asarray(v_rows, dtype=np.int32))
    r_idx = jnp.asarray(np.asarray(r_idx, dtype=np.int32))

    node_intra = jnp.concatenate([d_intra, t_intra], axis=0)
    node_inter = jnp.concatenate([d_inter, t_inter], axis=0)

    intra_tensor = jnp.concatenate(
        [jnp.take(node_intra, u_rows, axis=0),
         jnp.take(node_intra, v_rows, axis=0),
         jnp.take(rel_emb_intra, r_idx, axis=0)], axis=-1).astype(dtype)
    inter_tensor = jnp.concatenate(
        [jnp.take(node_inter, u_rows, axis=0),
         jnp.take(node_inter, v_rows, axis=0),
         jnp.take(rel_emb_inter, r_idx, axis=0)], axis=-1).astype(dtype)
    return intra_tensor, inter_tensor


def _reference(intra_tensor, inter_tensor, w_intra, b_intra, w_inter, b_inter,
               a1, a2):
    return (a1 * jnp.tanh(intra_tensor @ w_intra.T + b_intra)
            + a2 * jnp.tanh(inter_tensor @ w_inter.T + b_inter))


if __name__ == "__main__":
    # ---- synthetic config (mirrors __init__ shapes) ------------------------
    num_rels = 4
    rel_emb_dim = 8
    intra_fc_in = 16
    inter_fc_in = 12
    in1 = 2 * intra_fc_in + rel_emb_dim   # 40
    in2 = 2 * inter_fc_in + rel_emb_dim   # 32
    num_drugs, num_targets = 5, 6

    id2rel = {
        0: ('drug', 'dd', 'drug'),
        1: ('drug', 'dt', 'target'),
        2: ('target', 'td', 'drug'),
        3: ('target', 'tt', 'target'),
    }
    did_sub = {i: i for i in range(num_drugs)}              # drug node id -> row
    tid_sub = {10 + i: i for i in range(num_targets)}       # target node id -> row

    triplets = [
        (0, 1, 0), (2, 11, 1), (12, 3, 2), (13, 14, 3),
        (4, 2, 0), (1, 15, 1), (10, 0, 2), (11, 13, 3),
    ]

    # ---- deterministic parameter / input init ------------------------------
    key = jax.random.PRNGKey(0)
    ks = jax.random.split(key, 12)
    d_intra = jax.random.normal(ks[0], (num_drugs, intra_fc_in), jnp.float32)
    t_intra = jax.random.normal(ks[1], (num_targets, intra_fc_in), jnp.float32)
    d_inter = jax.random.normal(ks[2], (num_drugs, inter_fc_in), jnp.float32)
    t_inter = jax.random.normal(ks[3], (num_targets, inter_fc_in), jnp.float32)
    rel_emb_intra = jax.random.normal(ks[4], (num_rels, rel_emb_dim), jnp.float32)
    rel_emb_inter = jax.random.normal(ks[5], (num_rels, rel_emb_dim), jnp.float32)
    w_intra = jax.random.normal(ks[6], (1, in1), jnp.float32) * 0.1  # nn.Linear(in1, 1)
    b_intra = jax.random.normal(ks[7], (1,), jnp.float32) * 0.1
    w_inter = jax.random.normal(ks[8], (1, in2), jnp.float32) * 0.1  # nn.Linear(in2, 1)
    b_inter = jax.random.normal(ks[9], (1,), jnp.float32) * 0.1
    a1, a2 = 0.6, 0.2

    # ---- glue: vectorized gather/concat (f32 for tight check) --------------
    intra_tensor, inter_tensor = build_feature_tensors(
        d_intra, d_inter, did_sub, t_intra, t_inter, tid_sub,
        rel_emb_intra, rel_emb_inter, triplets, id2rel, dtype=jnp.float32)

    # ---- 1) small case (module shapes), f32, single grid step --------------
    run_f32 = jax.jit(functools.partial(hard_mix_predict, a1=a1, a2=a2))
    out = jax.block_until_ready(
        run_f32(intra_tensor, inter_tensor, w_intra, b_intra, w_inter, b_inter))
    ref = _reference(intra_tensor, inter_tensor, w_intra, b_intra, w_inter,
                     b_inter, a1, a2)
    assert out.shape == (len(triplets), 1)
    assert jnp.allclose(out, ref, atol=1e-5), (out, ref)

    # ---- 2) larger case: multi-step ragged grid (T=300, TM=128), f32 -------
    Tb = 300
    big_intra = jax.random.normal(ks[10], (Tb, in1), jnp.float32)
    big_inter = jax.random.normal(ks[11], (Tb, in2), jnp.float32)
    run_grid = jax.jit(functools.partial(hard_mix_predict, a1=a1, a2=a2, tm=128))
    out_big = jax.block_until_ready(
        run_grid(big_intra, big_inter, w_intra, b_intra, w_inter, b_inter))
    ref_big = _reference(big_intra, big_inter, w_intra, b_intra, w_inter,
                         b_inter, a1, a2)
    assert out_big.shape == (Tb, 1)
    assert jnp.allclose(out_big, ref_big, atol=1e-5), "ragged grid path mismatch"

    # ---- 3) production path: bf16 features cast upstream, default TM -------
    run_prod = jax.jit(functools.partial(hard_mix_predict, a1=a1, a2=a2))
    out_bf16 = jax.block_until_ready(
        run_prod(big_intra.astype(jnp.bfloat16), big_inter.astype(jnp.bfloat16),
                 w_intra, b_intra, w_inter, b_inter))
    assert out_bf16.shape == (Tb, 1)
    assert jnp.allclose(out_bf16, ref_big, atol=3e-2), "bf16 path mismatch"

    print("KERNEL_OK")
</pallas_src>

<mosaic_0001>
module attributes {stable_mosaic.version = 11 : i64} {
  func.func @_hard_mix_kernel(%arg0: i32, %arg1: memref<8x40xf32, #tpu.memory_space<vmem>>, %arg2: memref<8x32xf32, #tpu.memory_space<vmem>>, %arg3: memref<40x2xf32, #tpu.memory_space<vmem>>, %arg4: memref<32x2xf32, #tpu.memory_space<vmem>>, %arg5: memref<1x2xf32, #tpu.memory_space<vmem>>, %arg6: memref<8x1xf32, #tpu.memory_space<vmem>>) attributes {dimension_semantics = [#tpu.dimension_semantics<parallel>], iteration_bounds = array<i64: 1>, scalar_prefetch = 0 : i64, scratch_operands = 0 : i64, tpu.core_type = #tpu.core_type<tc>, window_params = [{transform_indices = @transform_0, window_bounds = array<i64: 8, 40>}, {transform_indices = @transform_1, window_bounds = array<i64: 8, 32>}, {pipeline_mode = #tpu.pipeline_mode<synchronous>, transform_indices = @transform_2, window_bounds = array<i64: 40, 2>}, {pipeline_mode = #tpu.pipeline_mode<synchronous>, transform_indices = @transform_3, window_bounds = array<i64: 32, 2>}, {pipeline_mode = #tpu.pipeline_mode<synchronous>, transform_indices = @transform_4, window_bounds = array<i64: 1, 2>}, {transform_indices = @transform_5, window_bounds = array<i64: 8, 1>}]} {
    %c0 = arith.constant 0 : index
    %c0_0 = arith.constant 0 : index
    %0 = vector.load %arg1[%c0, %c0_0] : memref<8x40xf32, #tpu.memory_space<vmem>>, vector<8x40xf32>
    %c0_1 = arith.constant 0 : index
    %c0_2 = arith.constant 0 : index
    %1 = vector.load %arg3[%c0_1, %c0_2] : memref<40x2xf32, #tpu.memory_space<vmem>>, vector<40x2xf32>
    %cst = arith.constant dense<0.000000e+00> : vector<8x2xf32>
    %2 = tpu.matmul %0, %1, %cst {dimension_numbers = #tpu.dot_dimension_numbers<[1], [0], [0], [1], [0, 0, 1, 1], [], []>} : vector<8x40xf32>, vector<40x2xf32>, vector<8x2xf32> -> vector<8x2xf32>
    %c0_3 = arith.constant 0 : index
    %c0_4 = arith.constant 0 : index
    %3 = vector.load %arg2[%c0_3, %c0_4] : memref<8x32xf32, #tpu.memory_space<vmem>>, vector<8x32xf32>
    %c0_5 = arith.constant 0 : index
    %c0_6 = arith.constant 0 : index
    %4 = vector.load %arg4[%c0_5, %c0_6] : memref<32x2xf32, #tpu.memory_space<vmem>>, vector<32x2xf32>
    %cst_7 = arith.constant dense<0.000000e+00> : vector<8x2xf32>
    %5 = tpu.matmul %3, %4, %cst_7 {dimension_numbers = #tpu.dot_dimension_numbers<[1], [0], [0], [1], [0, 0, 1, 1], [], []>} : vector<8x32xf32>, vector<32x2xf32>, vector<8x2xf32> -> vector<8x2xf32>
    %6 = arith.addf %2, %5 : vector<8x2xf32>
    %c0_8 = arith.constant 0 : index
    %c0_9 = arith.constant 0 : index
    %7 = vector.load %arg5[%c0_8, %c0_9] : memref<1x2xf32, #tpu.memory_space<vmem>>, vector<1x2xf32>
    %8 = vector.broadcast %7 : vector<1x2xf32> to vector<8x2xf32>
    %9 = arith.addf %6, %8 : vector<8x2xf32>
    %10 = math.tanh %9 : vector<8x2xf32>
    %11 = vector.extract_strided_slice %10 {offsets = [0, 0], sizes = [8, 1], strides = [1, 1]} : vector<8x2xf32> to vector<8x1xf32>
    %cst_10 = arith.constant 6.000000e-01 : f32
    %12 = vector.broadcast %cst_10 : f32 to vector<8x1xf32>
    %13 = arith.mulf %12, %11 : vector<8x1xf32>
    %14 = vector.extract_strided_slice %10 {offsets = [0, 1], sizes = [8, 1], strides = [1, 1]} : vector<8x2xf32> to vector<8x1xf32>
    %cst_11 = arith.constant 2.000000e-01 : f32
    %15 = vector.broadcast %cst_11 : f32 to vector<8x1xf32>
    %16 = arith.mulf %15, %14 : vector<8x1xf32>
    %17 = arith.addf %13, %16 : vector<8x1xf32>
    %c0_12 = arith.constant 0 : index
    %c0_13 = arith.constant 0 : index
    %18 = vector.load %arg6[%c0_12, %c0_13] : memref<8x1xf32, #tpu.memory_space<vmem>>, vector<8x1xf32>
    tpu.vector_store %arg6[%c0_12, %c0_13], %17 {strides = array<i32>} : memref<8x1xf32, #tpu.memory_space<vmem>>, vector<8x1xf32>,
    return
  }
  func.func @transform_0(%arg0: i32) -> (i32, i32) {
    %c0_i32 = arith.constant 0 : i32
    %c0_i32_0 = arith.constant 0 : i32
    return %arg0, %c0_i32 : i32, i32
  }
  func.func @transform_1(%arg0: i32) -> (i32, i32) {
    %c0_i32 = arith.constant 0 : i32
    %c0_i32_0 = arith.constant 0 : i32
    return %arg0, %c0_i32 : i32, i32
  }
  func.func @transform_2(%arg0: i32) -> (i32, i32) {
    %c0_i32 = arith.constant 0 : i32
    %c0_i32_0 = arith.constant 0 : i32
    %c0_i32_1 = arith.constant 0 : i32
    return %c0_i32, %c0_i32_0 : i32, i32
  }
  func.func @transform_3(%arg0: i32) -> (i32, i32) {
    %c0_i32 = arith.constant 0 : i32
    %c0_i32_0 = arith.constant 0 : i32
    %c0_i32_1 = arith.constant 0 : i32
    return %c0_i32, %c0_i32_0 : i32, i32
  }
  func.func @transform_4(%arg0: i32) -> (i32, i32) {
    %c0_i32 = arith.constant 0 : i32
    %c0_i32_0 = arith.constant 0 : i32
    %c0_i32_1 = arith.constant 0 : i32
    return %c0_i32, %c0_i32_0 : i32, i32
  }
  func.func @transform_5(%arg0: i32) -> (i32, i32) {
    %c0_i32 = arith.constant 0 : i32
    %c0_i32_0 = arith.constant 0 : i32
    return %arg0, %c0_i32 : i32, i32
  }
}

</mosaic_0001>

<bundles_post_ra>
// kernel: hard_mix_predict.1
= control target key start
LH: loop header
LB: loop body
LE: loop exit
PB: predicated region body
PF: predicated region fallthrough
CT: control target
= control target key end

     0   :  { %v257_v0 = vmov 0.0|0.0   ;;  %vm258_vm0 = vmmov 0   ;;  %v259_v8 = vmov 0.0   ;;  %vm31_vm1 = vcmask 261120   ;;  %s330_s2 = inlined_call_operand.vmem [shape: f32[40,2], index: 2, kind: input, shape index: {}]   ;;  %s331_s3 = inlined_call_operand.vmem [shape: f32[32,2], index: 3, kind: input, shape index: {}]   ;;  %s332_s1 = inlined_call_operand.vmem [shape: f32[8,32], index: 1, kind: input, shape index: {}]   ;;  %s333_s0 = inlined_call_operand.vmem [shape: f32[8,40], index: 0, kind: input, shape index: {}]   ;;  %s334_s4 = inlined_call_operand.vmem [shape: f32[1,2], index: 4, kind: input, shape index: {}]   ;;  %s335_s5 = inlined_call_operand.vmem [shape: f32[8,1], index: 5, kind: output, shape index: {}]  }
   0x1   :  { %245 = vmatprep.subr.bf16.mxu1 %v257_v0  ;;  %239 = vmatprep.subr.bf16.mxu0 %v257_v0  ;;  %v21_v1 = vld [vmem:[%s330_s2] sm:$0xff]  ;;  %v22_v2 = vld [vmem:[%s330_s2 + $0x8] sm:$0xff]  ;;  %v23_v6 = vld [vmem:[%s330_s2 + $0x10] sm:$0xff]  ;;  %vm105_vm2 = vcmask 326656   ;;  %vm195_vm3 = vcmask 7168  }
   0x2   :  { %v27_v3 = vld [vmem:[%s331_s3] sm:$0xff]  ;;  %v246_v4 = vpack.c.bf16 %v22_v2, %v21_v1  ;;  %v28_v5 = vld [vmem:[%s331_s3 + $0x8] sm:$0xff]  ;;  %v24_v7 = vld [vmem:[%s330_s2 + $0x18] sm:$0xff]  ;;  %223 = vmatprep.mubr.msk.f32.mxu0 %vm258_vm0, %v259_v8  ;;  %236 = vmatprep.mubr.msk.f32.mxu1 %vm258_vm0, %v259_v8 }
   0x3   :  { %v240_v9 = vpack.c.bf16 %v28_v5, %v27_v3  ;;  %v29_v10 = vld [vmem:[%s331_s3 + $0x10] sm:$0xff]  ;;  %v30_v11 = vld [vmem:[%s331_s3 + $0x18] sm:$0xff]  ;;  %v249_v12 = vpack.c.bf16 %v24_v7, %v23_v6  ;;  %v26_v14 = vld [vmem:[%s332_s1] sm:$0xff]  ;;  %s260_s1 = smov 127  }
   0x4   :  { %247 = vmatpush3.bf16.msra.mxu1 %v246_v4  ;;  %v243_v13 = vpack.c.bf16 %v30_v11, %v29_v10  ;;  %v25_v15 = vld [vmem:[%s330_s2 + $0x20] sm:$0xff] }
   0x5   :  { %241 = vmatpush3.bf16.msra.mxu0 %v240_v9  ;;  %248 = vmatprep.subr.bf16.mxu1 %v257_v0  ;;  %v20_v16 = vld [vmem:[%s333_s0] sm:$0xff] }
   0x6   :  { %242 = vmatprep.subr.bf16.mxu0 %v257_v0  ;;  %v203_v20 = vld [vmem:[%s334_s4] ss:$0 sm:$0xff] }
   0x8   :  { %250 = vmatpush3.bf16.msra.mxu1 %v249_v12 }
   0x9   :  { %244 = vmatpush3.bf16.msra.mxu0 %v243_v13  ;;  %234 = vmatprep.subr.mxu1 %v259_v8 }
   0xc   :  { %224 = vmatmul.mubr.msk.f32.vlgmr.msra.gmra.mrb[0].mxu0 %vm31_vm1, %v26_v14  ;;  %235 = vmatpush3.msra.mxu1 %v25_v15 }
   0xd   :  { %237 = vmatmul.mubr.msk.f32.vlgmr.msra.gmra.mrb[0].mxu1 %vm105_vm2, %v20_v16 }
  0xdf   :  { %v101_v17 = vpop.f32.mrb[0].mxu0 }
  0xe0   :  { %v225_v18 = vpop.f32.mrb[1].mxu0  ;;  %v175_v19 = vpop.f32.mrb[0].mxu1 }
  0xe1   :  { %v176_v21 = vadd.f32 %v175_v19, %v101_v17  ;;  %v238_v22 = vpop.f32.mrb[1].mxu1 }
  0xe3   :  { %v186_v23 = vadd.f32 %v203_v20, %v176_v21 }
  0xe5   :  { %255 = vtanh.f32 %v186_v23 }
  0xef   :  { %v256_v24 = vpop.eup %255 }
  0xf0   :  { %v189_v25 = vmul.f32 0.2, %v256_v24  ;;  %v188_v26 = vmul.f32 0.6, %v256_v24 }
  0xf2   :  { %191 = vrot.lane.b32.xlu0 %v189_v25, %s260_s1 }
 0x164   :  { %v192_v27 = vpop.permute.xlu0 %191 }
 0x165   :  { %v194_v28 = vadd.f32 %v192_v27, %v188_v26 }
 0x167   :  { %196 = vst.msk [vmem:[%s335_s5] sm:$0xff] %vm195_vm3, %v194_v28 }

</bundles_post_ra>
